<compile_context>
chip_gen: v5e
topology: v5e:2x2
jax: 0.10.0
libtpu: 0.0.40
codegen_flags: <defaults>
</compile_context>

<pallas_src>
import functools
import math

import jax
import jax.numpy as jnp
from jax.experimental import pallas as pl
from jax.experimental.pallas import tpu as pltpu


def _cdiv(a, b):
    return (a + b - 1) // b


def _round_up(x, m):
    return _cdiv(x, m) * m


def graph_attention_kernel(
    x_ref,      # [TILE_M, E]      bf16 flattened (B*S) query rows (current tile)
    kT_ref,     # [E, N]           bf16 pre-projected keys, transposed, 1/sqrt(E) folded
    v_ref,      # [N, E]           bf16 pre-projected values
    wqg_ref,    # [E, E_pad + H]   bf16 fused [Wq | 0-pad | Wg1]
    bqg_ref,    # [1, E_pad + H]   f32  fused [bq | 0-pad | bg1]
    wg2_ref,    # [H, E]           bf16
    bg2_ref,    # [1, E]           f32
    wo_ref,     # [E, O]           bf16
    bo_ref,     # [1, O]           f32
    out_ref,    # [TILE_M, O]      f32
    *, e_dim, e_pad,
):
    x = x_ref[...]                                   # bf16

    # One wide MXU pass of the x tile against the fused [Wq | Wg1]; f32 acc.
    qh = jnp.dot(x, wqg_ref[...], preferred_element_type=jnp.float32) + bqg_ref[...]
    q = qh[:, :e_dim]                                # [TILE_M, E]  f32
    h = jnp.maximum(qh[:, e_pad:], 0.0)              # [TILE_M, H]  f32 (ReLU), lane-aligned split

    # Attention scores [TILE_M, N]; softmax scale pre-folded into kT.
    scores = jnp.dot(q.astype(kT_ref.dtype), kT_ref[...],
                     preferred_element_type=jnp.float32)

    # Numerically stable softmax in f32; reciprocal on the EUP slot.
    scores = scores - jnp.max(scores, axis=-1, keepdims=True)
    p = jnp.exp(scores)
    attn = p * pl.reciprocal(jnp.sum(p, axis=-1, keepdims=True), approx=True)

    # Attention output [TILE_M, E].
    attn_out = jnp.dot(attn.astype(v_ref.dtype), v_ref[...],
                       preferred_element_type=jnp.float32)

    # Gate tail: Linear(H, E) -> Sigmoid (f32 VPU/EUP math).
    g = jnp.dot(h.astype(wg2_ref.dtype), wg2_ref[...],
                preferred_element_type=jnp.float32) + bg2_ref[...]
    gates = jax.nn.sigmoid(g)

    # Gated attention + residual (residual == query_input), then output proj.
    y = attn_out * gates + x.astype(jnp.float32)
    out = jnp.dot(y.astype(wo_ref.dtype), wo_ref[...],
                  preferred_element_type=jnp.float32) + bo_ref[...]
    out_ref[...] = out.astype(out_ref.dtype)


def graph_attention(q_in, k_in, v_in, params, *, tile_m=256):
    """q_in: [B, S, E], k_in: [N, E], v_in: [N, E] -> [B, S, O] (float32)."""
    B, S, E = q_in.shape
    N = k_in.shape[0]
    H = params["wg1"].shape[1]
    O = params["wo"].shape[1]

    scale = 1.0 / math.sqrt(E)
    cdt = jnp.bfloat16

    # ---- batch-invariant work hoisted out of the kernel (tiny [N,E]@[E,E]) ----
    k_proj = k_in @ params["wk"] + params["bk"]          # [N, E]
    v_proj = (v_in @ params["wv"] + params["bv"]).astype(cdt)   # [N, E]
    kT = (k_proj * scale).T.astype(cdt)                  # [E, N], scale folded, transposed once

    # ---- fuse the two matmuls sharing LHS x: [Wq | Wg1], Wq padded to a lane boundary ----
    E_pad = _round_up(E, 128)
    wq_pad = jnp.pad(params["wq"], ((0, 0), (0, E_pad - E)))
    bq_pad = jnp.pad(params["bq"], ((0, 0), (0, E_pad - E)))
    w_qg = jnp.concatenate([wq_pad, params["wg1"]], axis=1).astype(cdt)   # [E, E_pad+H]
    b_qg = jnp.concatenate([bq_pad, params["bg1"]], axis=1)               # [1, E_pad+H] f32
    wg2 = params["wg2"].astype(cdt)
    wo = params["wo"].astype(cdt)

    # ---- row tiling over flattened B*S ----
    M = B * S
    fused_w = E_pad + H
    # Cap tile so the widest live f32 intermediate (qh: [tile, E_pad+H]) stays ~<=128 KiB.
    rows_cap = max(8, ((128 * 1024) // (4 * fused_w)) // 8 * 8)
    tm = max(8, min(tile_m, rows_cap))
    num_tiles = _cdiv(M, tm)
    if M > 8:
        num_tiles = max(num_tiles, 2)      # keep both v7x TensorCores busy
    tile = _round_up(_cdiv(M, num_tiles), 8)
    num_tiles = _cdiv(M, tile)             # re-derive; minimizes tail padding
    M_pad = num_tiles * tile

    x = q_in.reshape(M, E).astype(cdt)
    if M_pad != M:
        x = jnp.pad(x, ((0, M_pad - M), (0, 0)))

    stream_bufs = min(3, max(2, num_tiles))

    def _invariant(shape):
        # Grid-invariant operand: single VMEM buffer, DMA'd once.
        return pl.BlockSpec(shape, lambda i: (0, 0), pipeline_mode=pl.Buffered(1))

    in_specs = [
        pl.BlockSpec((tile, E), lambda i: (i, 0),
                     pipeline_mode=pl.Buffered(stream_bufs)),   # x row tile (streamed)
        _invariant((E, N)),            # kT
        _invariant((N, E)),            # v
        _invariant((E, fused_w)),      # [Wq | Wg1]
        _invariant((1, fused_w)),      # [bq | bg1]
        _invariant((H, E)),            # Wg2
        _invariant((1, E)),            # bg2
        _invariant((E, O)),            # Wo
        _invariant((1, O)),            # bo
    ]
    out_specs = pl.BlockSpec((tile, O), lambda i: (i, 0),
                             pipeline_mode=pl.Buffered(stream_bufs))

    # Explicit VMEM budget (matters on v7x: 64 MiB physical).
    weight_bytes = 2 * (E * N + N * E + E * fused_w + H * E + E * O) + 4 * (fused_w + E + O)
    stream_bytes = stream_bufs * tile * (2 * E + 4 * O)
    vmem_limit = int(min(64 * 1024 * 1024,
                         max(16 * 1024 * 1024, 4 * (weight_bytes + stream_bytes))))
    # TODO(synk): at production N/E/H, chunk kT/v over N (online softmax) and Wg1/Wg2 over H
    # so the resident weight set fits v7x's 64 MiB VMEM.

    flops = 2 * M_pad * (E * fused_w + E * N + N * E + H * E + E * O)
    transcendentals = M_pad * (N + E)                  # exp + sigmoid
    bytes_accessed = 2 * M_pad * E + weight_bytes + 4 * M_pad * O

    out = pl.pallas_call(
        functools.partial(graph_attention_kernel, e_dim=E, e_pad=E_pad),
        out_shape=jax.ShapeDtypeStruct((M_pad, O), jnp.float32),
        grid_spec=pl.GridSpec(
            grid=(num_tiles,),
            in_specs=in_specs,
            out_specs=out_specs,
        ),
        compiler_params=pltpu.CompilerParams(
            dimension_semantics=("parallel",),
            vmem_limit_bytes=vmem_limit,
        ),
        cost_estimate=pl.CostEstimate(
            flops=flops,
            transcendentals=transcendentals,
            bytes_accessed=bytes_accessed,
        ),
    )(x, kT, v_proj, w_qg, b_qg, wg2, params["bg2"], wo, params["bo"])

    if M_pad != M:
        out = out[:M]
    return out.reshape(B, S, O)


def reference(q_in, k_in, v_in, params):
    """Pure-JAX f32 reference mirroring the PyTorch forward pass."""
    B, S, E = q_in.shape
    q = q_in @ params["wq"] + params["bq"]                       # [B,S,E]
    k = k_in @ params["wk"] + params["bk"]                       # [N,E]
    v = v_in @ params["wv"] + params["bv"]                       # [N,E]
    k = jnp.broadcast_to(k[None], (B,) + k.shape)
    v = jnp.broadcast_to(v[None], (B,) + v.shape)
    scores = jnp.einsum("bse,bne->bsn", q, k) * (1.0 / math.sqrt(E))
    attn = jax.nn.softmax(scores, axis=-1)
    out = jnp.einsum("bsn,bne->bse", attn, v)
    h = jax.nn.relu(q_in @ params["wg1"] + params["bg1"])
    gates = jax.nn.sigmoid(h @ params["wg2"] + params["bg2"])
    gated = out * gates
    return (gated + q_in) @ params["wo"] + params["bo"]


def init_params(key, E, H, O):
    names_shapes = [
        ("wq", (E, E)), ("bq", (1, E)),
        ("wk", (E, E)), ("bk", (1, E)),
        ("wv", (E, E)), ("bv", (1, E)),
        ("wg1", (E, H)), ("bg1", (1, H)),
        ("wg2", (H, E)), ("bg2", (1, E)),
        ("wo", (E, O)), ("bo", (1, O)),
    ]
    keys = jax.random.split(key, len(names_shapes))
    params = {}
    for (name, shape), k in zip(names_shapes, keys):
        scale = 0.05 if name.startswith("w") else 0.01
        params[name] = (scale * jax.random.normal(k, shape)).astype(jnp.float32)
    return params


if __name__ == "__main__":
    B, S, E, N = 2, 8, 32, 8           # batch, seq, embed_dim, num key/value nodes
    H, O = 4 * E, E                    # gate_hidden_dim, output_dim (module defaults)

    key = jax.random.PRNGKey(0)
    k_in_key, k_kv1, k_kv2, k_params = jax.random.split(key, 4)
    q_in = jax.random.normal(k_in_key, (B, S, E), dtype=jnp.float32)
    k_in = jax.random.normal(k_kv1, (N, E), dtype=jnp.float32)
    v_in = jax.random.normal(k_kv2, (N, E), dtype=jnp.float32)
    params = init_params(k_params, E, H, O)

    out = graph_attention(q_in, k_in, v_in, params)
    out = jax.block_until_ready(out)

    ref = reference(q_in, k_in, v_in, params)
    assert out.shape == (B, S, O), out.shape
    # Tolerance accounts for bf16 MXU operands + approx reciprocal in the softmax.
    assert jnp.allclose(out, ref, atol=2e-2, rtol=2e-2), float(jnp.max(jnp.abs(out - ref)))

    print("KERNEL_OK")
</pallas_src>

<mosaic_0001>
module attributes {stable_mosaic.version = 11 : i64} {
  func.func @graph_attention_kernel(%arg0: i32, %arg1: memref<8x32xbf16, #tpu.memory_space<vmem>>, %arg2: memref<32x8xbf16, #tpu.memory_space<vmem>>, %arg3: memref<8x32xbf16, #tpu.memory_space<vmem>>, %arg4: memref<32x256xbf16, #tpu.memory_space<vmem>>, %arg5: memref<1x256xf32, #tpu.memory_space<vmem>>, %arg6: memref<128x32xbf16, #tpu.memory_space<vmem>>, %arg7: memref<1x32xf32, #tpu.memory_space<vmem>>, %arg8: memref<32x32xbf16, #tpu.memory_space<vmem>>, %arg9: memref<1x32xf32, #tpu.memory_space<vmem>>, %arg10: memref<8x32xf32, #tpu.memory_space<vmem>>) attributes {dimension_semantics = [#tpu.dimension_semantics<parallel>], iteration_bounds = array<i64: 2>, scalar_prefetch = 0 : i64, scratch_operands = 0 : i64, tpu.core_type = #tpu.core_type<tc>, window_params = [{pipeline_mode = #tpu.pipeline_mode<double_buffered>, transform_indices = @transform_0, window_bounds = array<i64: 8, 32>}, {pipeline_mode = #tpu.pipeline_mode<synchronous>, transform_indices = @transform_1, window_bounds = array<i64: 32, 8>}, {pipeline_mode = #tpu.pipeline_mode<synchronous>, transform_indices = @transform_2, window_bounds = array<i64: 8, 32>}, {pipeline_mode = #tpu.pipeline_mode<synchronous>, transform_indices = @transform_3, window_bounds = array<i64: 32, 256>}, {pipeline_mode = #tpu.pipeline_mode<synchronous>, transform_indices = @transform_4, window_bounds = array<i64: 1, 256>}, {pipeline_mode = #tpu.pipeline_mode<synchronous>, transform_indices = @transform_5, window_bounds = array<i64: 128, 32>}, {pipeline_mode = #tpu.pipeline_mode<synchronous>, transform_indices = @transform_6, window_bounds = array<i64: 1, 32>}, {pipeline_mode = #tpu.pipeline_mode<synchronous>, transform_indices = @transform_7, window_bounds = array<i64: 32, 32>}, {pipeline_mode = #tpu.pipeline_mode<synchronous>, transform_indices = @transform_8, window_bounds = array<i64: 1, 32>}, {pipeline_mode = #tpu.pipeline_mode<double_buffered>, transform_indices = @transform_9, window_bounds = array<i64: 8, 32>}]} {
    %c0 = arith.constant 0 : index
    %c0_0 = arith.constant 0 : index
    %0 = vector.load %arg1[%c0, %c0_0] : memref<8x32xbf16, #tpu.memory_space<vmem>>, vector<8x32xbf16>
    %c0_1 = arith.constant 0 : index
    %c0_2 = arith.constant 0 : index
    %1 = vector.load %arg4[%c0_1, %c0_2] : memref<32x256xbf16, #tpu.memory_space<vmem>>, vector<32x256xbf16>
    %cst = arith.constant dense<0.000000e+00> : vector<8x256xf32>
    %2 = tpu.matmul %0, %1, %cst {dimension_numbers = #tpu.dot_dimension_numbers<[1], [0], [0], [1], [0, 0, 1, 1], [], []>} : vector<8x32xbf16>, vector<32x256xbf16>, vector<8x256xf32> -> vector<8x256xf32>
    %c0_3 = arith.constant 0 : index
    %c0_4 = arith.constant 0 : index
    %3 = vector.load %arg5[%c0_3, %c0_4] : memref<1x256xf32, #tpu.memory_space<vmem>>, vector<1x256xf32>
    %4 = vector.broadcast %3 : vector<1x256xf32> to vector<8x256xf32>
    %5 = arith.addf %2, %4 : vector<8x256xf32>
    %6 = vector.extract_strided_slice %5 {offsets = [0, 0], sizes = [8, 32], strides = [1, 1]} : vector<8x256xf32> to vector<8x32xf32>
    %7 = vector.extract_strided_slice %5 {offsets = [0, 128], sizes = [8, 128], strides = [1, 1]} : vector<8x256xf32> to vector<8x128xf32>
    %cst_5 = arith.constant 0.000000e+00 : f32
    %8 = vector.broadcast %cst_5 : f32 to vector<8x128xf32>
    %9 = arith.maximumf %7, %8 : vector<8x128xf32>
    %10 = arith.truncf %6 : vector<8x32xf32> to vector<8x32xbf16>
    %c0_6 = arith.constant 0 : index
    %c0_7 = arith.constant 0 : index
    %11 = vector.load %arg2[%c0_6, %c0_7] : memref<32x8xbf16, #tpu.memory_space<vmem>>, vector<32x8xbf16>
    %cst_8 = arith.constant dense<0.000000e+00> : vector<8x8xf32>
    %12 = tpu.matmul %10, %11, %cst_8 {dimension_numbers = #tpu.dot_dimension_numbers<[1], [0], [0], [1], [0, 0, 1, 1], [], []>} : vector<8x32xbf16>, vector<32x8xbf16>, vector<8x8xf32> -> vector<8x8xf32>
    %cst_9 = arith.constant dense<0xFF800000> : vector<8xf32>
    %13 = vector.multi_reduction <maximumf>, %12, %cst_9 [1] : vector<8x8xf32> to vector<8xf32>
    %14 = vector.shape_cast %13 : vector<8xf32> to vector<8x1xf32>
    %15 = vector.broadcast %14 : vector<8x1xf32> to vector<8x8xf32>
    %16 = arith.subf %12, %15 : vector<8x8xf32>
    %17 = math.exp %16 : vector<8x8xf32>
    %cst_10 = arith.constant dense<0.000000e+00> : vector<8xf32>
    %18 = vector.multi_reduction <add>, %17, %cst_10 [1] : vector<8x8xf32> to vector<8xf32>
    %19 = vector.shape_cast %18 : vector<8xf32> to vector<8x1xf32>
    %20 = tpu.reciprocal %19 {approx = true} : vector<8x1xf32> -> vector<8x1xf32>
    %21 = vector.broadcast %20 : vector<8x1xf32> to vector<8x8xf32>
    %22 = arith.mulf %17, %21 : vector<8x8xf32>
    %23 = arith.truncf %22 : vector<8x8xf32> to vector<8x8xbf16>
    %c0_11 = arith.constant 0 : index
    %c0_12 = arith.constant 0 : index
    %24 = vector.load %arg3[%c0_11, %c0_12] : memref<8x32xbf16, #tpu.memory_space<vmem>>, vector<8x32xbf16>
    %cst_13 = arith.constant dense<0.000000e+00> : vector<8x32xf32>
    %25 = tpu.matmul %23, %24, %cst_13 {dimension_numbers = #tpu.dot_dimension_numbers<[1], [0], [0], [1], [0, 0, 1, 1], [], []>} : vector<8x8xbf16>, vector<8x32xbf16>, vector<8x32xf32> -> vector<8x32xf32>
    %26 = arith.truncf %9 : vector<8x128xf32> to vector<8x128xbf16>
    %c0_14 = arith.constant 0 : index
    %c0_15 = arith.constant 0 : index
    %27 = vector.load %arg6[%c0_14, %c0_15] : memref<128x32xbf16, #tpu.memory_space<vmem>>, vector<128x32xbf16>
    %cst_16 = arith.constant dense<0.000000e+00> : vector<8x32xf32>
    %28 = tpu.matmul %26, %27, %cst_16 {dimension_numbers = #tpu.dot_dimension_numbers<[1], [0], [0], [1], [0, 0, 1, 1], [], []>} : vector<8x128xbf16>, vector<128x32xbf16>, vector<8x32xf32> -> vector<8x32xf32>
    %c0_17 = arith.constant 0 : index
    %c0_18 = arith.constant 0 : index
    %29 = vector.load %arg7[%c0_17, %c0_18] : memref<1x32xf32, #tpu.memory_space<vmem>>, vector<1x32xf32>
    %30 = vector.broadcast %29 : vector<1x32xf32> to vector<8x32xf32>
    %31 = arith.addf %28, %30 : vector<8x32xf32>
    %32 = arith.negf %31 : vector<8x32xf32>
    %33 = math.exp %32 : vector<8x32xf32>
    %cst_19 = arith.constant 1.000000e+00 : f32
    %34 = vector.broadcast %cst_19 : f32 to vector<8x32xf32>
    %35 = arith.addf %34, %33 : vector<8x32xf32>
    %36 = arith.divf %34, %35 : vector<8x32xf32>
    %37 = arith.mulf %25, %36 : vector<8x32xf32>
    %38 = arith.extf %0 : vector<8x32xbf16> to vector<8x32xf32>
    %39 = arith.addf %37, %38 : vector<8x32xf32>
    %40 = arith.truncf %39 : vector<8x32xf32> to vector<8x32xbf16>
    %c0_20 = arith.constant 0 : index
    %c0_21 = arith.constant 0 : index
    %41 = vector.load %arg8[%c0_20, %c0_21] : memref<32x32xbf16, #tpu.memory_space<vmem>>, vector<32x32xbf16>
    %cst_22 = arith.constant dense<0.000000e+00> : vector<8x32xf32>
    %42 = tpu.matmul %40, %41, %cst_22 {dimension_numbers = #tpu.dot_dimension_numbers<[1], [0], [0], [1], [0, 0, 1, 1], [], []>} : vector<8x32xbf16>, vector<32x32xbf16>, vector<8x32xf32> -> vector<8x32xf32>
    %c0_23 = arith.constant 0 : index
    %c0_24 = arith.constant 0 : index
    %43 = vector.load %arg9[%c0_23, %c0_24] : memref<1x32xf32, #tpu.memory_space<vmem>>, vector<1x32xf32>
    %44 = vector.broadcast %43 : vector<1x32xf32> to vector<8x32xf32>
    %45 = arith.addf %42, %44 : vector<8x32xf32>
    %c0_25 = arith.constant 0 : index
    %c0_26 = arith.constant 0 : index
    %46 = vector.load %arg10[%c0_25, %c0_26] : memref<8x32xf32, #tpu.memory_space<vmem>>, vector<8x32xf32>
    tpu.vector_store %arg10[%c0_25, %c0_26], %45 {strides = array<i32>} : memref<8x32xf32, #tpu.memory_space<vmem>>, vector<8x32xf32>,
    return
  }
  func.func @transform_0(%arg0: i32) -> (i32, i32) {
    %c0_i32 = arith.constant 0 : i32
    %c0_i32_0 = arith.constant 0 : i32
    return %arg0, %c0_i32 : i32, i32
  }
  func.func @transform_1(%arg0: i32) -> (i32, i32) {
    %c0_i32 = arith.constant 0 : i32
    %c0_i32_0 = arith.constant 0 : i32
    %c0_i32_1 = arith.constant 0 : i32
    return %c0_i32, %c0_i32_0 : i32, i32
  }
  func.func @transform_2(%arg0: i32) -> (i32, i32) {
    %c0_i32 = arith.constant 0 : i32
    %c0_i32_0 = arith.constant 0 : i32
    %c0_i32_1 = arith.constant 0 : i32
    return %c0_i32, %c0_i32_0 : i32, i32
  }
  func.func @transform_3(%arg0: i32) -> (i32, i32) {
    %c0_i32 = arith.constant 0 : i32
    %c0_i32_0 = arith.constant 0 : i32
    %c0_i32_1 = arith.constant 0 : i32
    return %c0_i32, %c0_i32_0 : i32, i32
  }
  func.func @transform_4(%arg0: i32) -> (i32, i32) {
    %c0_i32 = arith.constant 0 : i32
    %c0_i32_0 = arith.constant 0 : i32
    %c0_i32_1 = arith.constant 0 : i32
    return %c0_i32, %c0_i32_0 : i32, i32
  }
  func.func @transform_5(%arg0: i32) -> (i32, i32) {
    %c0_i32 = arith.constant 0 : i32
    %c0_i32_0 = arith.constant 0 : i32
    %c0_i32_1 = arith.constant 0 : i32
    return %c0_i32, %c0_i32_0 : i32, i32
  }
  func.func @transform_6(%arg0: i32) -> (i32, i32) {
    %c0_i32 = arith.constant 0 : i32
    %c0_i32_0 = arith.constant 0 : i32
    %c0_i32_1 = arith.constant 0 : i32
    return %c0_i32, %c0_i32_0 : i32, i32
  }
  func.func @transform_7(%arg0: i32) -> (i32, i32) {
    %c0_i32 = arith.constant 0 : i32
    %c0_i32_0 = arith.constant 0 : i32
    %c0_i32_1 = arith.constant 0 : i32
    return %c0_i32, %c0_i32_0 : i32, i32
  }
  func.func @transform_8(%arg0: i32) -> (i32, i32) {
    %c0_i32 = arith.constant 0 : i32
    %c0_i32_0 = arith.constant 0 : i32
    %c0_i32_1 = arith.constant 0 : i32
    return %c0_i32, %c0_i32_0 : i32, i32
  }
  func.func @transform_9(%arg0: i32) -> (i32, i32) {
    %c0_i32 = arith.constant 0 : i32
    %c0_i32_0 = arith.constant 0 : i32
    return %arg0, %c0_i32 : i32, i32
  }
}

</mosaic_0001>

<bundles_post_ra>
// kernel: tpu_custom_call.1
= control target key start
LH: loop header
LB: loop body
LE: loop exit
PB: predicated region body
PF: predicated region fallthrough
CT: control target
= control target key end

     0   :  { %s1104_s0 = inlined_call_operand.vmem [shape: bf16[16,32], index: 0, kind: input, shape index: {}]   ;;  %s1105_s1 = inlined_call_operand.vmem [shape: bf16[32,8], index: 1, kind: input, shape index: {}]   ;;  %s1106_s2 = inlined_call_operand.vmem [shape: bf16[8,32], index: 2, kind: input, shape index: {}]   ;;  %s1107_s3 = inlined_call_operand.vmem [shape: bf16[32,256], index: 3, kind: input, shape index: {}]   ;;  %s1108_s4 = inlined_call_operand.vmem [shape: f32[1,256], index: 4, kind: input, shape index: {}]   ;;  %s1109_s5 = inlined_call_operand.vmem [shape: bf16[128,32], index: 5, kind: input, shape index: {}]   ;;  %s1110_s6 = inlined_call_operand.vmem [shape: f32[1,32], index: 6, kind: input, shape index: {}]   ;;  %s1111_s7 = inlined_call_operand.vmem [shape: bf16[32,32], index: 7, kind: input, shape index: {}]   ;;  %s1112_s8 = inlined_call_operand.vmem [shape: f32[1,32], index: 8, kind: input, shape index: {}]   ;;  %s1113_s9 = inlined_call_operand.hbm [shape: f32[16,32], index: 9, kind: output, shape index: {}]  }
   0x1   :  { %1114 = sst [smem:[#allocation5_spill]] %s1104_s0 }
   0x2   :  { %14 = vsyncpa [#allocation3], 0 }
   0x3   :  { %16 = vsyncpa [#allocation3 + $0x1], 0  ;;  %s934_s30 = smov 0   ;;  %s936_s10 = smov 0  }
   0x4   :  { %s938_s11 = smov 0   ;;  %s940_s12 = smov 0  }
   0x5 LB: > { %s955_s13 = sadd.s32 4294967295, %s882_s12   ;;  %s675_s14 = sadd.s32 4294967294, %s882_s12   ;;  %s882_s12 = sphi %s940_s12, %s1121_s12   ;;  %s878_s11 = sphi %s938_s11, %s1120_s11   ;;  %s874_s10 = sphi %s936_s10, %s1119_s10   ;;  %s870_s30 = sphi %s934_s30, %s1118_s30  }
   0x6   : > { %s959_s15 = sadd.s32 1, %s882_s12   ;;  %s223_s16 = sadd.s32 1, %s878_s11 }
   0x7   : > { %s220_s17 = ssub.s32 %s882_s12, %s959_s15  ;;  %p233_p0 = scmp.ne.s32.totalorder %s878_s11, %s874_s10 }
   0x8   : > { %p221_p1 = scmp.eq.s32.totalorder %s220_s17, 0  ;;  %p234_p2 = scmp.eq.s32.totalorder %s955_s13, 1 }
   0x9   : > { %p239_p3 = scmp.ne.s32.totalorder %s874_s10, %s870_s30  ;;  %p240_p4 = scmp.eq.s32.totalorder %s675_s14, 1 }
   0xa   : > { %s970_s18 = scalar_select %p221_p1, %s878_s11, %s223_s16  }
   0xb   : > { %p972_p5 = por %p234_p2, %p233_p0  ;;  %p976_p6 = por %p240_p4, %p239_p3 }
   0xc   : > { %p678_p7 = scmp.ge.s32.totalorder %s882_s12, 1  ;;  %p289_p8 = scmp.lt.s32.totalorder %s882_s12, 3 }
   0xe   : > { %p290_p9 = pnand %p678_p7, %p289_p8 }
   0xf   : > { %p324_p10 = scmp.lt.s32.totalorder (!%p290_p9), %s955_s13, 1  ;;  %s1117_s0 = sld [smem:[#allocation5_spill]] (!%p290_p9) }
  0x10   : > { %293 = sbr.rel (%p290_p9) target bundleno = 815 (0x32f), region = 56  ;;  %s321_s24 = sand.u32 (!%p290_p9), 1, %s874_s10  }
  0x11   : > { %s752_s25 = sshll.u32 (!%p290_p9), %s955_s13, 3  ;;  %s679_s26 = sshll.u32 (!%p290_p9), %s321_s24, 3 }
  0x12   : > { %s611_s29 = scalar_lea.hbm (!%p290_p9), %s1113_s9, %s752_s25 }
  0x13   : > { %s615_s22 = sshll.u32 (!%p290_p9), %s611_s29, 4  ;;  %s616_s22 = int_to_ptr.hbm [resolvable:$true] %s615_s22 }
  0x15   : > { %v691_v0 = vld [vmem:[%s1107_s3 + $0x10] sm:$0xf]  ;;  %v758_v1 = vld [vmem:[%s1107_s3 + $0x14] sm:$0xf0]  ;;  %v683_v2 = vld [vmem:[%s1107_s3] sm:$0xf] }
  0x16   : > { %v692_v3 = vor.u32 %v758_v1, %v691_v0  ;;  %v756_v4 = vld [vmem:[%s1107_s3 + $0x4] sm:$0xf0]  ;;  %s325_s16 = scalar_select %p324_p10, %s955_s13, 1  ;;  %vm360_vm0 = vcmask 261120   ;;  %v759_v8 = vld [vmem:[%s1105_s1] sm:$0xff]  ;;  %vm424_vm1 = vcmask 64512  }
  0x17   : > { %v760_v5 = vld [vmem:[%s1105_s1 + $0x8] sm:$0xff]  ;;  %v684_v6 = vor.u32 %v756_v4, %v683_v2  ;;  %v334_v9 = vld [vmem:[%s1108_s4] sm:$0x3]  ;;  %v757_v15 = vld [vmem:[%s1107_s3 + $0x14] sm:$0xf]  ;;  %vm441_vm2 = vcmask 1043456  }
  0x18   : > { %370 = vmatpush.bf16.msra.mxu0 %v692_v3  ;;  %417 = vmatpush.bf16.msra.mxu2 %v760_v5  ;;  %s680_s17 = sshll.u32 %s325_s16, 2  ;;  %v336_v10 = vperm.slane %v334_v9, 0  ;;  %v693_v16 = vld [vmem:[%s1107_s3 + $0x18] sm:$0xf0]  ;;  %v755_v17 = vld [vmem:[%s1107_s3 + $0x4] sm:$0xf] }
  0x19   : > { %s327_s23 = scalar_lea.vmem %s1117_s0, %s680_s17  ;;  %v696_v18 = vor.u32 %v757_v15, %v693_v16  ;;  %v685_v19 = vld [vmem:[%s1107_s3 + $0x8] sm:$0xf0]  ;;  %v768_v24 = vld [vmem:[%s1109_s5 + $0x38] sm:$0xff]  ;;  %v767_v25 = vld [vmem:[%s1109_s5 + $0x30] sm:$0xff]  ;;  %v337_v32 = vperm.slane %v334_v9, 1  ;;  %s323_s17 = scalar_lea.vmem [#allocation2], %s679_s26 }
  0x1a   : > { %v1002_v7 = vld [vmem:[%s327_s23] sm:$0xf]  ;;  %v688_v20 = vor.u32 %v755_v17, %v685_v19  ;;  %527 = vmatpush.bf16.msra.mxu3 %v768_v24  ;;  %v766_v28 = vld [vmem:[%s1109_s5 + $0x28] sm:$0xff]  ;;  %v764_v31 = vld [vmem:[%s1109_s5 + $0x18] sm:$0xff]  ;;  %s613_s21 = sshll.u32 %s323_s17, 4  ;;  %s601_s13 = scalar_lea.sflag [#allocation3], %s321_s24  ;;  %s614_s21 = int_to_ptr.vmem [resolvable:$true] %s613_s21 }
  0x1b   : > { %383 = vmatpush.bf16.msra.mxu1 %v696_v18  ;;  %v437_v26 = vld [vmem:[%s1106_s2] sm:$0xf]  ;;  %v763_v33 = vld [vmem:[%s1109_s5 + $0x10] sm:$0xff]  ;;  %v762_v39 = vld [vmem:[%s1109_s5 + $0x8] sm:$0xff]  ;;  %v560_v3 = vunpack.c.l.bf16 %v1002_v7  ;;  %s834_s23 = sshra.s32 %s616_s22, 4  ;;  %s840_s26 = scalar_lea.hbm %s1113_s9, 16  ;;  %s835_s23 = int_to_ptr.hbm [resolvable:$true] %s834_s23 }
  0x1c   : > { %371 = vmatpush.bf16.msra.mxu0 %v684_v6  ;;  %418 = vmatpush.bf16.msra.mxu2 %v759_v8  ;;  %v443_v27 = vsel %vm441_vm2, %v437_v26, 0  ;;  %v765_v29 = vld [vmem:[%s1109_s5 + $0x20] sm:$0xff]  ;;  %v770_v45 = vld [vmem:[%s1111_s7 + $0x8] sm:$0xff]  ;;  %s836_s0 = scalar_lea.hbm %s835_s23, 8  ;;  %p841_p0 = scmp.lt.s32.totalorder %s835_s23, %s1113_s9 }
  0x1d   : > { %v761_v41 = vld [vmem:[%s1109_s5] sm:$0xff]  ;;  %p837_p11 = scmp.ne.s32.totalorder %s835_s23, %s836_s0  ;;  %p842_p1 = scmp.lt.s32.totalorder %s840_s26, %s836_s0 }
  0x1e   : > { %528 = vmatpush.bf16.msra.mxu3 %v767_v25  ;;  %v769_v47 = vld [vmem:[%s1111_s7] sm:$0xff] }
  0x1f   : > { %697 = vmatmul.msk.bf16.vlgmr.msra.gmra.mxu0 %vm360_vm0, %v1002_v7  ;;  %384 = vmatpush.bf16.msra.mxu1 %v688_v20  ;;  %v810_v53 = vld [vmem:[%s1110_s6] ss:$0 sm:$0xff]  ;;  %p838_p12 = pnand %p837_p11, %p972_p5  ;;  %p843_p2 = por %p842_p1, %p841_p0 }
  0x20   : > { %592 = vmatpush.bf16.msrb.mxu0 %v770_v45 }
  0x21   : > { %p839_p13 = pneg %p838_p12 }
  0x22   : > { %698 = vmatmul.msk.bf16.vlgmr.msra.gmra.mxu1 %vm360_vm0, %v1002_v7  ;;  %529 = vmatpush.bf16.msra.mxu3 %v766_v28  ;;  %v811_v7 = vld [vmem:[%s1112_s8] ss:$0 sm:$0xff] }
  0x23   : > { %452 = vmatpush.bf16.msrb.mxu1 %v443_v27  ;;  %p844_p3 = pnand %p843_p2, %p839_p13 }
  0x24   : > { %593 = vmatpush.bf16.msrb.mxu0 %v769_v47 }
  0x26   : > { %530 = vmatpush.bf16.msra.mxu3 %v765_v29 }
  0x2a   : > { %531 = vmatpush.bf16.msra.mxu3 %v764_v31 }
  0x2e   : > { %532 = vmatpush.bf16.msra.mxu3 %v763_v33 }
  0x32   : > { %533 = vmatpush.bf16.msra.mxu3 %v762_v39 }
  0x36   : > { %534 = vmatpush.bf16.msra.mxu3 %v761_v41 }
  0x9c   : > { %v373_v11 = vpop.f32.mrf.mxu0 }
  0x9d   : > { %v374_v12 = vadd.f32 %v373_v11, %v336_v10 }
  0x9f   : > { %v391_v13 = vpack.c.bf16 %v374_v12, %v374_v12  ;;  %v386_v30 = vpop.f32.mrf.mxu1 }
  0xa0   : > { %v387_v36 = vadd.f32 %v386_v30, %v337_v32 }
  0xa1   : > { %707 = vmatmul.msk.bf16.vlgmr.msra.gmra.mxu2 %vm360_vm0, %v391_v13 }
  0xa2   : > { %v390_v40 = vmax.f32 %v387_v36, 0.0 }
  0xa4   : > { %v375_v14 = vpop.f32.mrf.mxu0  ;;  %v458_v42 = vpack.c.bf16 %v390_v40, %v390_v40 }
  0xa6   : > { %535 = vmatmul.bf16.vlgmr.msra.gmra.mxu3 %v458_v42 }
  0xa7   : > { %v388_v37 = vpop.f32.mrf.mxu1 }
 0x124   : > { %v420_v21 = vpop.f32.mrf.mxu2 }
 0x125   : > { %v425_v22 = vsel %vm424_vm1, %v420_v21, -inf }
 0x126   : > { %426 = vmax.xlane.f32.xlu0 %v425_v22 }
 0x129   : > { %v536_v51 = vpop.f32.mrf.mxu3 }
 0x12a   : > { %v537_v54 = vadd.f32 %v810_v53, %v536_v51 }
 0x12c   : > { %v422_v23 = vpop.f32.mrf.mxu2  ;;  %v741_v55 = vmul.f32 -1.442695, %v537_v54 }
 0x131   : > { %v538_v52 = vpop.f32.mrf.mxu3 }
 0x199   : > { %v427_v34 = vpop.xlane.xlu0 %426 }
 0x19a   : > { %v428_v35 = vsub.f32 %v420_v21, %v427_v34 }
 0x19c   : > { %v429_v38 = vmul.f32 1.442695, %v428_v35 }
 0x19e   : > { %812 = vpow2.f32 %v429_v38 }
 0x1a4   : > { %v813_v43 = vpop.eup %812 }
 0x1a5   : > { %v431_v44 = vsel %vm424_vm1, %v813_v43, 0.0 }
 0x1a6   : > { %432 = vadd.xlane.f32.xlu0 %v431_v44 }
 0x219   : > { %v433_v46 = vpop.xlane.xlu0 %432 }
 0x21a   : > { %814 = vrcp.f32 %v433_v46 }
 0x21b   : > { %816 = vpow2.f32 %v741_v55 }
 0x220   : > { %v815_v48 = vpop.eup %814 }
 0x221   : > { %v435_v49 = vmul.f32 %v815_v48, %v813_v43  ;;  %v817_v56 = vpop.eup %816 }
 0x222   : > { %v543_v57 = vadd.f32 1.0, %v817_v56 }
 0x223   : > { %v436_v50 = vpack.c.bf16 %v435_v49, %v435_v49 }
 0x224   : > { %818 = vrcp.f32 %v543_v57  ;;  %vm549_vm3 = vweird.f32 %v543_v57  ;;  %v555_v62 = vand.u32 2147483648, %v543_v57  ;;  %v553_v0 = vand.u32 2147483647, %v543_v57 }
 0x225   : > { %708 = vmatmul.msk.bf16.vlgmr.msrb.gmra.mxu1 %vm424_vm1, %v436_v50 }
 0x226   : > { %v556_v1 = vor.u32 1.1754944e-38, %v555_v62  ;;  %vm554_vm6 = vcmp.eq.f32.partialorder %v553_v0, 8.507059e+37 }
 0x22a   : > { %v819_v58 = vpop.eup %818 }
 0x22b   : > { %v545_v59 = vmul.f32 %v819_v58, %v543_v57  ;;  %vm550_vm4 = vweird.f32 %v819_v58 }
 0x22c   : > { %vm551_vm5 = vmor %vm549_vm3, %vm550_vm4 }
 0x22d   : > { %v546_v60 = vsub.f32 1.0, %v545_v59 }
 0x22f   : > { %v547_v61 = vmul.f32 %v819_v58, %v546_v60 }
 0x231   : > { %v548_v63 = vadd.f32 %v819_v58, %v547_v61 }
 0x233   : > { %v552_v2 = vsel %vm551_vm5, %v819_v58, %v548_v63 }
 0x234   : > { %v557_v5 = vsel %vm554_vm6, %v556_v1, %v552_v2 }
 0x2a2   : > { %v454_v4 = vpop.f32.mrf.mxu1 }
 0x2a3   : > { %v559_v6 = vmul.f32 %v557_v5, %v454_v4 }
 0x2a5   : > { %v561_v8 = vadd.f32 %v560_v3, %v559_v6 }
 0x2a7   : > { %v562_v9 = vpack.c.bf16 %v561_v8, %v561_v8 }
 0x2a9   : > { %750 = vmatmul.msk.bf16.vlgmr.msrb.gmra.mxu0 %vm360_vm0, %v562_v9 }
 0x2aa   : > { %v456_v10 = vpop.f32.mrf.mxu1 }
 0x326   : > { %v595_v11 = vpop.f32.mrf.mxu0 }
 0x327   : > { %v596_v12 = vadd.f32 %v811_v7, %v595_v11 }
 0x329   : > { %599 = vst.msk [vmem:[%s323_s17] sm:$0xff] %vm360_vm0, %v596_v12 }
 0x32a   : > { %847 = shalt.err (!%p844_p3)
}
 0x32b   : > { %771 = dma.vmem_to_hbm [thread:$0]  (%p972_p5), %s614_s21, 128, %s616_s22, %s601_s13  }
 0x32e   : > { %v597_v13 = vpop.f32.mrf.mxu0 }
 0x32f PF: > { %p777_p4 = scmp.ge.s32.totalorder %s882_s12, 2  ;;  %s627_s24 = sand.u32 1, %s870_s30  }
 0x330   : > { %s628_s14 = scalar_lea.sflag [#allocation3], %s627_s24 }
 0x331   : > { %p774_p7 = pnand %p777_p4, %p976_p6 }
 0x333   : > { %p775_p8 = pneg %p774_p7 }
 0x335   : > { %865 = dma.done.wait (%p775_p8), %s628_s14, 128  }
 0x336   : > { %867 = vsyncadd (%p775_p8), %s628_s14, 4294967168  ;;  %p19_p9 = scmp.ge.s32.totalorder %s959_s15, 4   ;;  %s1118_s30 = smov %s874_s10 }
 0x337   : > { %s1119_s10 = smov %s878_s11  ;;  %s1120_s11 = smov %s970_s18 }
 0x338   : > { %s1121_s12 = smov %s959_s15  ;;  %21 = sbr.rel (!%p19_p9) target bundleno = 5 (0x5), region = 91 }
 0x33d   :  { %634 = vsyncpa [#allocation3], 1 }
 0x33e   :  { %636 = vsyncpa [#allocation3 + $0x1], 1 }

</bundles_post_ra>
